<compile_context>
chip_gen: v6e
topology: v6e:2x2x1
jax: 0.10.0
libtpu: 0.0.40
codegen_flags: <defaults>
</compile_context>

<pallas_src>
from typing import NamedTuple

import jax
import jax.numpy as jnp
from jax.experimental import pallas as pl
from jax.experimental.pallas import tpu as pltpu


def _round_up(n: int, m: int) -> int:
    return ((n + m - 1) // m) * m


def feedforward_kernel(x_ref, w_ref, b_ref, o_ref):
    """One (tm, tn) f32 output tile, accumulated in place over the K grid axis.

    x_ref: (tm, tk) bf16
    w_ref: (tk, tn) bf16   (weight already transposed to [in, out])
    b_ref: (1, tn)  f32
    o_ref: (tm, tn) f32    (resident across K -> doubles as the accumulator)
    """
    k = pl.program_id(2)

    @pl.when(k == 0)
    def _init():
        # Fold the bias into the accumulator init (one broadcast per tile).
        o_ref[...] = jnp.broadcast_to(b_ref[...], o_ref.shape)

    # bf16 x bf16 -> f32 on the MXU, accumulated into the resident output tile.
    o_ref[...] += jnp.dot(
        x_ref[...], w_ref[...], preferred_element_type=jnp.float32
    )

    @pl.when(k == pl.num_programs(2) - 1)
    def _finalize():
        # Sigmoid (EUP) in place; output stays f32 and lane-dense.
        o_ref[...] = jax.nn.sigmoid(o_ref[...])


class FeedForwardParams(NamedTuple):
    wt_lo: jax.Array   # (Hp, Hp) bf16, [in, out] layout, zero-padded
    b2: jax.Array      # (1, Hp)  f32, zero-padded
    hidden_dim: int    # unpadded H


def prepare_feedforward_params(w, b) -> FeedForwardParams:
    """One-time prep: transpose to [in, out], cast to bf16, pad H up to 128s.

    Hoisted out of the per-call path so static weights are not re-streamed
    through extra XLA ops on every forward call.
    """
    H = w.shape[0]
    assert w.shape == (H, H) and b.shape == (H,)
    Hp = max(_round_up(H, 128), 128)

    wt = jnp.asarray(w, jnp.float32).T                     # (in, out)
    if Hp != H:
        wt = jnp.pad(wt, ((0, Hp - H), (0, Hp - H)))       # zero pad: no effect
    wt_lo = wt.astype(jnp.bfloat16)

    b2 = jnp.asarray(b, jnp.float32).reshape(1, H)
    if Hp != H:
        b2 = jnp.pad(b2, ((0, 0), (0, Hp - H)))
    return FeedForwardParams(wt_lo=wt_lo, b2=b2, hidden_dim=H)


def _pick_tm(B: int, cap: int = 512):
    """M tile + (possibly padded) batch. Avoids padding whenever possible."""
    if B <= cap:
        return B, B                       # block == full dim: always legal
    for t in (512, 384, 256, 128, 64, 32, 16):
        if B % t == 0:
            return t, B
    Bp = _round_up(B, 256)                # rare fallback: pad the batch
    return 256, Bp


def _pick_hw_tile(Hp: int, cap: int = 512) -> int:
    """Largest 128-multiple tile <= cap that divides Hp (Hp is a 128-multiple)."""
    for t in (512, 384, 256, 128):
        if t <= cap and Hp % t == 0:
            return t
    return 128


def feedforward_apply(x, params: FeedForwardParams):
    """sigmoid(x @ w.T + b) with pre-prepared weights (PyTorch Linear+Sigmoid)."""
    H = params.hidden_dim
    Hp = params.wt_lo.shape[0]
    B = x.shape[0]
    assert x.shape == (B, H)

    tm, Bp = _pick_tm(B)
    # N / K tiles: as large as VMEM comfortably allows (few MiB double-buffered,
    # safe even with v5e's 16 MiB default scoped VMEM / v7x's 64 MiB physical).
    tn = _pick_hw_tile(Hp)
    tk = _pick_hw_tile(Hp)
    # Keep >= 2 parallel grid steps so both TensorCores get work on v7x.
    if (Bp // tm) * (Hp // tn) == 1 and Hp >= 256:
        tn = max(128, (Hp // 2) // 128 * 128)   # still divides Hp (256/384/512)

    x_lo = x.astype(jnp.bfloat16)
    if Hp != H:
        x_lo = jnp.pad(x_lo, ((0, 0), (0, Hp - H)))   # zero K-pad: no effect
    if Bp != B:
        x_lo = jnp.pad(x_lo, ((0, Bp - B), (0, 0)))   # garbage rows sliced off

    grid = (Bp // tm, Hp // tn, Hp // tk)

    cost = pl.CostEstimate(
        flops=2 * Bp * Hp * Hp,
        transcendentals=Bp * Hp,
        bytes_accessed=Bp * Hp * 2 + Hp * Hp * 2 + Hp * 4 + Bp * Hp * 4,
    )

    out = pl.pallas_call(
        feedforward_kernel,
        out_shape=jax.ShapeDtypeStruct((Bp, Hp), jnp.float32),
        grid_spec=pltpu.PrefetchScalarGridSpec(
            num_scalar_prefetch=0,
            grid=grid,
            in_specs=[
                pl.BlockSpec((tm, tk), lambda i, j, k: (i, k)),   # x tile
                pl.BlockSpec((tk, tn), lambda i, j, k: (k, j)),   # w tile
                pl.BlockSpec((1, tn), lambda i, j, k: (0, j)),    # bias tile
            ],
            out_specs=pl.BlockSpec((tm, tn), lambda i, j, k: (i, j)),
        ),
        compiler_params=pltpu.CompilerParams(
            # M / N are independent (megacore-shardable); K is the reduction
            # axis and goes last so the output tile stays resident.
            dimension_semantics=("parallel", "parallel", "arbitrary"),
        ),
        cost_estimate=cost,
    )(x_lo, params.wt_lo, params.b2)

    if Bp != B or Hp != H:
        out = out[:B, :H]
    return out


def feedforward(x, w, b):
    """Convenience one-shot wrapper (prep + apply). Prefer caching the prep."""
    return feedforward_apply(x, prepare_feedforward_params(w, b))


if __name__ == "__main__":
    key = jax.random.PRNGKey(0)

    def run_case(case_key, batch, hidden_dim):
        k_x, k_w, k_b = jax.random.split(case_key, 3)
        # PyTorch Linear default init: U(-1/sqrt(in), 1/sqrt(in)).
        bound = hidden_dim ** -0.5
        w = jax.random.uniform(
            k_w, (hidden_dim, hidden_dim), jnp.float32, -bound, bound)
        b = jax.random.uniform(k_b, (hidden_dim,), jnp.float32, -bound, bound)
        x = jax.random.normal(k_x, (batch, hidden_dim), jnp.float32)

        params = prepare_feedforward_params(w, b)     # hoisted one-time prep
        out = jax.block_until_ready(feedforward_apply(x, params))

        # Reference matching kernel precision (bf16 operands, f32 accumulation).
        ref_lo = jax.nn.sigmoid(
            jnp.dot(x.astype(jnp.bfloat16), w.T.astype(jnp.bfloat16),
                    preferred_element_type=jnp.float32) + b)
        # Full-f32 module-semantics reference (looser tol due to bf16 inputs).
        ref_f32 = jax.nn.sigmoid(x @ w.T + b)

        assert out.shape == (batch, hidden_dim)
        assert jnp.allclose(out, ref_lo, atol=2e-3, rtol=0.0), \
            f"mismatch vs bf16 ref (B={batch}, H={hidden_dim})"
        assert jnp.allclose(out, ref_f32, atol=2e-2, rtol=0.0), \
            f"mismatch vs f32 ref (B={batch}, H={hidden_dim})"

    k1, k2 = jax.random.split(key)
    # PyTorchMLPModel default: hidden_dim = kwargs.get('hidden_dim', 256).
    run_case(k1, batch=128, hidden_dim=256)
    # Ragged case: H not a multiple of 128 exercises the H-padding path.
    run_case(k2, batch=40, hidden_dim=96)

    print("KERNEL_OK")
</pallas_src>

<mosaic_0001>
module attributes {stable_mosaic.version = 11 : i64} {
  func.func @feedforward_kernel(%arg0: i32, %arg1: i32, %arg2: i32, %arg3: memref<128x256xbf16, #tpu.memory_space<vmem>>, %arg4: memref<256x128xbf16, #tpu.memory_space<vmem>>, %arg5: memref<1x128xf32, #tpu.memory_space<vmem>>, %arg6: memref<128x128xf32, #tpu.memory_space<vmem>>) attributes {dimension_semantics = [#tpu.dimension_semantics<parallel>, #tpu.dimension_semantics<parallel>, #tpu.dimension_semantics<arbitrary>], iteration_bounds = array<i64: 1, 2, 1>, scalar_prefetch = 0 : i64, scratch_operands = 0 : i64, tpu.core_type = #tpu.core_type<tc>, window_params = [{transform_indices = @transform_0, window_bounds = array<i64: 128, 256>}, {transform_indices = @transform_1, window_bounds = array<i64: 256, 128>}, {transform_indices = @transform_2, window_bounds = array<i64: 1, 128>}, {transform_indices = @transform_3, window_bounds = array<i64: 128, 128>}]} {
    %c0_i32 = arith.constant 0 : i32
    %0 = arith.cmpi eq, %arg2, %c0_i32 : i32
    %1 = arith.extui %0 : i1 to i32
    %c0_i32_0 = arith.constant 0 : i32
    %2 = arith.cmpi ne, %1, %c0_i32_0 : i32
    scf.if %2 {
      %c0_10 = arith.constant 0 : index
      %c0_11 = arith.constant 0 : index
      %12 = vector.load %arg5[%c0_10, %c0_11] : memref<1x128xf32, #tpu.memory_space<vmem>>, vector<1x128xf32>
      %13 = vector.shape_cast %12 : vector<1x128xf32> to vector<1x128xf32>
      %14 = vector.broadcast %13 : vector<1x128xf32> to vector<128x128xf32>
      %c0_12 = arith.constant 0 : index
      %c0_13 = arith.constant 0 : index
      %15 = vector.load %arg6[%c0_12, %c0_13] : memref<128x128xf32, #tpu.memory_space<vmem>>, vector<128x128xf32>
      tpu.vector_store %arg6[%c0_12, %c0_13], %14 {strides = array<i32>} : memref<128x128xf32, #tpu.memory_space<vmem>>, vector<128x128xf32>,
    } else {
    }
    %c0 = arith.constant 0 : index
    %c0_1 = arith.constant 0 : index
    %3 = vector.load %arg6[%c0, %c0_1] : memref<128x128xf32, #tpu.memory_space<vmem>>, vector<128x128xf32>
    %c0_2 = arith.constant 0 : index
    %c0_3 = arith.constant 0 : index
    %4 = vector.load %arg3[%c0_2, %c0_3] : memref<128x256xbf16, #tpu.memory_space<vmem>>, vector<128x256xbf16>
    %c0_4 = arith.constant 0 : index
    %c0_5 = arith.constant 0 : index
    %5 = vector.load %arg4[%c0_4, %c0_5] : memref<256x128xbf16, #tpu.memory_space<vmem>>, vector<256x128xbf16>
    %cst = arith.constant dense<0.000000e+00> : vector<128x128xf32>
    %6 = tpu.matmul %4, %5, %cst {dimension_numbers = #tpu.dot_dimension_numbers<[1], [0], [0], [1], [0, 0, 1, 1], [], []>} : vector<128x256xbf16>, vector<256x128xbf16>, vector<128x128xf32> -> vector<128x128xf32>
    %7 = arith.addf %3, %6 : vector<128x128xf32>
    %c0_6 = arith.constant 0 : index
    %c0_7 = arith.constant 0 : index
    %8 = vector.load %arg6[%c0_6, %c0_7] : memref<128x128xf32, #tpu.memory_space<vmem>>, vector<128x128xf32>
    tpu.vector_store %arg6[%c0_6, %c0_7], %7 {strides = array<i32>} : memref<128x128xf32, #tpu.memory_space<vmem>>, vector<128x128xf32>,
    %c0_i32_8 = arith.constant 0 : i32
    %9 = arith.cmpi eq, %arg2, %c0_i32_8 : i32
    %10 = arith.extui %9 : i1 to i32
    %c0_i32_9 = arith.constant 0 : i32
    %11 = arith.cmpi ne, %10, %c0_i32_9 : i32
    scf.if %11 {
      %c0_10 = arith.constant 0 : index
      %c0_11 = arith.constant 0 : index
      %12 = vector.load %arg6[%c0_10, %c0_11] : memref<128x128xf32, #tpu.memory_space<vmem>>, vector<128x128xf32>
      %13 = arith.negf %12 : vector<128x128xf32>
      %14 = math.exp %13 : vector<128x128xf32>
      %cst_12 = arith.constant 1.000000e+00 : f32
      %15 = vector.broadcast %cst_12 : f32 to vector<128x128xf32>
      %16 = arith.addf %15, %14 : vector<128x128xf32>
      %17 = arith.divf %15, %16 : vector<128x128xf32>
      %c0_13 = arith.constant 0 : index
      %c0_14 = arith.constant 0 : index
      %18 = vector.load %arg6[%c0_13, %c0_14] : memref<128x128xf32, #tpu.memory_space<vmem>>, vector<128x128xf32>
      tpu.vector_store %arg6[%c0_13, %c0_14], %17 {strides = array<i32>} : memref<128x128xf32, #tpu.memory_space<vmem>>, vector<128x128xf32>,
    } else {
    }
    return
  }
  func.func @transform_0(%arg0: i32, %arg1: i32, %arg2: i32) -> (i32, i32) {
    %c0_i32 = arith.constant 0 : i32
    return %arg0, %arg2 : i32, i32
  }
  func.func @transform_1(%arg0: i32, %arg1: i32, %arg2: i32) -> (i32, i32) {
    %c0_i32 = arith.constant 0 : i32
    return %arg2, %arg1 : i32, i32
  }
  func.func @transform_2(%arg0: i32, %arg1: i32, %arg2: i32) -> (i32, i32) {
    %c0_i32 = arith.constant 0 : i32
    %c0_i32_0 = arith.constant 0 : i32
    return %c0_i32, %arg1 : i32, i32
  }
  func.func @transform_3(%arg0: i32, %arg1: i32, %arg2: i32) -> (i32, i32) {
    %c0_i32 = arith.constant 0 : i32
    return %arg0, %arg1 : i32, i32
  }
}

</mosaic_0001>

<bundles_post_ra>
// kernel: tpu_custom_call.1
= control target key start
LH: loop header
LB: loop body
LE: loop exit
PB: predicated region body
PF: predicated region fallthrough
CT: control target
= control target key end

     0   :  { %8 = vsyncpa [#allocation3], 0  ;;  %s1658_s0 = inlined_call_operand.hbm [shape: bf16[128,256], index: 0, kind: input, shape index: {}]   ;;  %s1659_s1 = inlined_call_operand.hbm [shape: bf16[256,256], index: 1, kind: input, shape index: {}]   ;;  %s1660_s2 = inlined_call_operand.vmem [shape: f32[1,256], index: 2, kind: input, shape index: {}]   ;;  %s1661_s3 = inlined_call_operand.hbm [shape: f32[128,256], index: 3, kind: output, shape index: {}]  }
   0x1   :  { %9 = vsyncpa [#allocation6], 0 }
   0x2   :  { %11 = vsyncpa [#allocation6 + $0x1], 0 }
   0x3   :  { %12 = vsyncpa [#allocation4], 0 }
   0x4   :  { %14 = vsyncpa [#allocation4 + $0x1], 0  ;;  %s1416_s12 = smov 0   ;;  %s1418_s13 = smov 0  }
   0x5   :  { %s1420_s14 = smov 0   ;;  %s1422_s15 = smov 0  }
   0x6   :  { %s1424_s16 = smov 0   ;;  %s1426_s17 = smov 0  }
   0x7 LB: > { %1667 = sst [smem:[#allocation11_spill]] %s1384_s17  ;;  %s918_s18 = sadd.s32 4294967295, %s1384_s17   ;;  %s1384_s17 = sphi %s1426_s17, %s20_s17   ;;  %s1380_s16 = sphi %s1424_s16, %s1687_s16   ;;  %s1376_s15 = sphi %s1422_s15, %s1686_s15   ;;  %s1372_s14 = sphi %s1420_s14, %s1685_s14   ;;  %s1368_s13 = sphi %s1418_s13, %s1684_s13   ;;  %s1364_s12 = sphi %s1416_s12, %s1683_s12  }
   0x8   : > { %s919_s19 = sadd.s32 4294967294, %s1384_s17   ;;  %p83_p0 = scmp.ne.s32.totalorder %s1372_s14, %s1368_s13 }
   0x9   : > { %p84_p1 = scmp.eq.s32.totalorder %s1384_s17, 0  ;;  %p89_p2 = scmp.ne.s32.totalorder %s1368_s13, %s1364_s12 }
   0xa   : > { %p1453_p3 = scmp.eq.s32.totalorder %s918_s18, 0  ;;  %p141_p5 = scmp.eq.s32.totalorder %s918_s18, 1 }
   0xb   : > { %p1457_p4 = por %p84_p1, %p83_p0  ;;  %p147_p7 = scmp.eq.s32.totalorder %s919_s19, 1 }
   0xc   : > { %p1463_p6 = por %p1453_p3, %p89_p2  ;;  %p1467_p8 = por %p141_p5, %p83_p0 }
   0xd   : > { %p920_p9 = scmp.ge.s32.totalorder %s1384_s17, 1  ;;  %p1472_p10 = por %p147_p7, %p89_p2 }
   0xe   : > { %s1670_s22 = scalar_select %p1463_p6, 1, 0 }
   0xf   : > { %s1671_s23 = scalar_select %p1467_p8, 1, 0 }
  0x10   : > { %s1672_s24 = scalar_select %p1472_p10, 1, 0 }
  0x11   : > { %p154_p11 = scmp.lt.s32.totalorder %s1384_s17, 3  ;;  %s1386_s26 = smov [#allocation2]  }
  0x12   : > { %1673 = sst [smem:[#allocation12_spill]] %s1672_s24  ;;  %s172_s27 = sshll.u32 %s1386_s26, 4  ;;  %s173_s27 = int_to_ptr.vmem [resolvable:$true] %s172_s27 }
  0x13   : > { %p1477_p12 = pnand %p920_p9, %p154_p11  ;;  %p1083_p1 = scmp.lt.s32.totalorder %s1384_s17, 2 }
  0x14   : > { %s35_s30 = sadd.s32 1, %s1380_s16  ;;  %s1257_s4 = scalar_lea.vmem %s173_s27, 2048 }
  0x15   : > { %p1070_p13 = pneg %p1477_p12  ;;  %p1493_p2 = pnand %p1083_p1, %p1457_p4 }
  0x16   : > { %p1258_p9 = scmp.ne.s32.totalorder %s173_s27, %s1257_s4  ;;  %p1265_p0 = scmp.lt.s32.totalorder %s173_s27, %s173_s27 }
  0x17   : > { %p1487_p5 = pnand %p1070_p13, %p1453_p3  ;;  %p1266_p8 = scmp.lt.s32.totalorder %s1257_s4, %s1257_s4 }
  0x19   : > { %p1248_p7 = pneg %p1487_p5  ;;  %p1267_p6 = por %p1266_p8, %p1265_p0 }
  0x1b   : > { %p1260_p11 = pnand %p1258_p9, %p1248_p7 }
  0x1d   : > { %p1261_p10 = pneg %p1260_p11 }
  0x1f   : > { %p1268_p13 = pnand %p1267_p6, %p1261_p10 }
  0x21   : > { %1271 = shalt.err (!%p1268_p13)
}
  0x22   : > { %s1387_s5 = smov 128   ;;  %s1388_s6 = smov 8  }
  0x23   : > { %1073 = dma.hbm_to_vmem [thread:$0]  (!%p1487_p5), %s1658_s0, 2048, %s173_s27, [#allocation3], %s1387_s5, %s1387_s5, %s1388_s6  }
  0x24   : > { %p37_p4 = scmp.ge.s32.totalorder %s35_s30, 2  ;;  %s76_s9 = sadd.s32 1, %s1372_s14 }
  0x25   : > { %s186_s10 = sand.u32 1, %s1372_s14   ;;  %s924_s19 = sshll.u32 %s1380_s16, 6 }
  0x26   : > { %s1689_s30 = smov (%p37_p4, %s35_s30), 0  ;;  %s923_s11 = sshll.u32 %s186_s10, 7 }
  0x27   : > { %s72_s18 = ssub.s32 %s1380_s16, %s1689_s30  ;;  %s198_s28 = scalar_lea.hbm %s1659_s1, %s924_s19 }
  0x28   : > { %p74_p6 = scmp.eq.s32.totalorder %s72_s18, 0  ;;  %s190_s4 = scalar_lea.vmem [#allocation5], %s923_s11 }
  0x29   : > { %s199_s17 = sshll.u32 %s190_s4, 4  ;;  %s187_s27 = scalar_lea.sflag [#allocation6], %s186_s10  ;;  %s200_s17 = int_to_ptr.vmem [resolvable:$true] %s199_s17 }
  0x2a   : > { %s1518_s24 = scalar_select %p74_p6, %s1372_s14, %s76_s9  }
  0x2b   : > { %p1274_p8 = pneg %p1493_p2  ;;  %s1285_s6 = scalar_lea.vmem %s200_s17, 2048 }
  0x2c   : > { %p1286_p10 = scmp.ne.s32.totalorder %s200_s17, %s1285_s6  ;;  %s1389_s7 = smov [#allocation5]  }
  0x2d   : > { %s1290_s8 = sshll.u32 %s1389_s7, 4  ;;  %s1291_s8 = int_to_ptr.vmem [resolvable:$false] %s1290_s8 }
  0x2e   : > { %p1288_p0 = pnand %p1286_p10, %p1274_p8  ;;  %s1292_s18 = scalar_lea.vmem %s1291_s8, 4096 }
  0x2f   : > { %p1293_p5 = scmp.lt.s32.totalorder %s200_s17, %s1291_s8  ;;  %p1294_p7 = scmp.lt.s32.totalorder %s1292_s18, %s1285_s6 }
  0x30   : > { %p1289_p1 = pneg %p1288_p0 }
  0x31   : > { %p1295_p9 = por %p1294_p7, %p1293_p5 }
  0x33   : > { %p1296_p11 = pnand %p1295_p9, %p1289_p1 }
  0x35   : > { %1299 = shalt.err (!%p1296_p11)
}
  0x36   : > { %s1390_s11 = smov 64   ;;  %s1391_s9 = smov 4  }
  0x37   : > { %1077 = dma.hbm_to_vmem [thread:$0]  (!%p1493_p2), %s198_s28, 2048, %s200_s17, %s187_s27, %s1387_s5, %s1390_s11, %s1391_s9  }
  0x38   : > { %217 = sbr.rel (%p1477_p12) target bundleno = 376 (0x178), region = 32 }
  0x3d   : > { %1351 = dma.done.wait (%p1453_p3), [#allocation3], 2048  }
  0x3e   : > { %1353 = vsyncadd (%p1453_p3), [#allocation3], 4294965248  ;;  %s1532_s10 = sand.u32 1, %s1368_s13   ;;  %p1677_p2 = scmp.ne.s32.totalorder %s1670_s22, 0 }
  0x3f   : > { %s927_s19 = sshll.u32 %s1532_s10, 7  ;;  %s224_s29 = scalar_lea.sflag [#allocation6], %s1532_s10 }
  0x40   : > { %s1538_s17 = scalar_lea.vmem [#allocation5], %s927_s19 }
  0x41   : > { %1355 = dma.done.wait (%p1677_p2), %s224_s29, 2048  }
  0x42   : > { %1357 = vsyncadd (%p1677_p2), %s224_s29, 4294965248  ;;  %v1142_v0 = vld [vmem:[%s1538_s17 + $0x78] sm:$0xff]   ;;  %v1144_v2 = vld [vmem:[%s1538_s17 + $0x70] sm:$0xff]   ;;  %p256_p3 = scmp.lt.s32.totalorder %s1376_s15, 1  ;;  %s1585_s21 = scalar_lea.vmem [#allocation7], %s927_s19 }
  0x43   : > { %v1143_v1 = vld [vmem:[%s1538_s17 + $0x38] sm:$0xff]   ;;  %982 = vmatprep.subr.bf16.mxu0 %v1142_v0  ;;  %1046 = vmatprep.subr.bf16.mxu1 %v1142_v0  ;;  %v1145_v3 = vld [vmem:[%s1538_s17 + $0x30] sm:$0xff]   ;;  %v1146_v4 = vld [vmem:[%s1538_s17 + $0x68] sm:$0xff]   ;;  %s979_s26 = sshll.u32 %s1376_s15, 7  ;;  %s804_s28 = sshll.u32 %s1585_s21, 4  ;;  %s1608_s28 = int_to_ptr.vmem [resolvable:$true] %s804_s28 }
  0x44   : > { %983 = vmatpush3.bf16.msra.mxu0 %v1143_v1  ;;  %1054 = vmatpush3.bf16.msra.mxu1 %v1143_v1  ;;  %v1147_v5 = vld [vmem:[%s1538_s17 + $0x28] sm:$0xff]   ;;  %v1148_v6 = vld [vmem:[%s1538_s17 + $0x60] sm:$0xff]   ;;  %v1150_v8 = vld [vmem:[%s1538_s17 + $0x58] sm:$0xff]   ;;  %s257_s20 = scalar_select %p256_p3, %s1376_s15, 1 }
  0x45   : > { %984 = vmatprep.subr.bf16.mxu0 %v1144_v2  ;;  %1047 = vmatprep.subr.bf16.mxu1 %v1144_v2  ;;  %v1149_v7 = vld [vmem:[%s1538_s17 + $0x20] sm:$0xff]   ;;  %v1151_v9 = vld [vmem:[%s1538_s17 + $0x18] sm:$0xff]   ;;  %v1152_v10 = vld [vmem:[%s1538_s17 + $0x50] sm:$0xff]   ;;  %s1606_s6 = scalar_lea.hbm %s1661_s3, %s979_s26  ;;  %s789_s15 = scalar_lea.sflag [#allocation4], %s1532_s10 }
  0x46   : > { %v1160_v11 = vld [vmem:[#allocation2 + $0x4] ss:$8 sps:$4 sm:$0xff]   ;;  %v1153_v13 = vld [vmem:[%s1538_s17 + $0x10] sm:$0xff]   ;;  %v1158_v18 = vld [vmem:[#allocation2] ss:$8 sps:$4 sm:$0xff]   ;;  %s258_s5 = scalar_lea.vmem %s1660_s2, %s257_s20  ;;  %s1300_s7 = scalar_lea.vmem %s1608_s28, 2048 }
  0x47   : > { %v1163_v12 = vld [vmem:[#allocation2 + $0x44] ss:$8 sps:$4 sm:$0xff]   ;;  %560 = vmatprep.mubr.bf16.mxu0 %v1160_v11  ;;  %v1161_v19 = vld [vmem:[#allocation2 + $0x40] ss:$8 sps:$4 sm:$0xff]   ;;  %v1164_v20 = vld [vmem:[#allocation2 + $0x14] ss:$8 sps:$4 sm:$0xff]   ;;  %p1301_p12 = scmp.ne.s32.totalorder %s1608_s28, %s1300_s7 }
  0x48   : > { %985 = vmatpush3.bf16.msra.mxu0 %v1145_v3  ;;  %1055 = vmatpush3.bf16.msra.mxu1 %v1145_v3  ;;  %v1154_v14 = vld [vmem:[%s1538_s17 + $0x48] sm:$0xff]   ;;  %v1156_v16 = vld [vmem:[%s1538_s17 + $0x40] sm:$0xff]   ;;  %v1166_v21 = vld [vmem:[#allocation2 + $0x54] ss:$8 sps:$4 sm:$0xff]   ;;  %p1678_p13 = scmp.ne.s32.totalorder %s1671_s23, 0  ;;  %s1392_s8 = smov [#allocation7]  }
  0x49   : > { %986 = vmatprep.subr.bf16.mxu0 %v1146_v4  ;;  %1048 = vmatprep.subr.bf16.mxu1 %v1146_v4  ;;  %v1155_v15 = vld [vmem:[%s1538_s17 + $0x8] sm:$0xff]   ;;  %v1157_v17 = vld [vmem:[%s1538_s17] sm:$0xff]   ;;  %v1168_v22 = vld [vmem:[#allocation2 + $0x10] ss:$8 sps:$4 sm:$0xff]   ;;  %s1304_s18 = sshll.u32 %s1392_s8, 4  ;;  %s1305_s18 = int_to_ptr.vmem [resolvable:$false] %s1304_s18 }
  0x4a   : > { %592 = vmatprep.mubr.bf16.mxu1 %v1163_v12  ;;  %v1169_v23 = vld [vmem:[#allocation2 + $0x50] ss:$8 sps:$4 sm:$0xff]   ;;  %v1170_v24 = vld [vmem:[#allocation2 + $0x24] ss:$8 sps:$4 sm:$0xff]   ;;  %v1174_v26 = vld [vmem:[#allocation2 + $0x20] ss:$8 sps:$4 sm:$0xff]   ;;  %p1302_p4 = pnand %p1301_p12, %p1678_p13  ;;  %p1307_p8 = scmp.lt.s32.totalorder %s1608_s28, %s1305_s18 }
  0x4b   : > { %v1172_v25 = vld [vmem:[#allocation2 + $0x64] ss:$8 sps:$4 sm:$0xff]   ;;  %v1175_v27 = vld [vmem:[#allocation2 + $0x60] ss:$8 sps:$4 sm:$0xff]   ;;  %v1176_v28 = vld [vmem:[#allocation2 + $0x34] ss:$8 sps:$4 sm:$0xff]  }
  0x4c   : > { %987 = vmatpush3.bf16.msra.mxu0 %v1147_v5  ;;  %1056 = vmatpush3.bf16.msra.mxu1 %v1147_v5  ;;  %v1178_v29 = vld [vmem:[#allocation2 + $0x74] ss:$8 sps:$4 sm:$0xff]   ;;  %v1180_v30 = vld [vmem:[#allocation2 + $0x30] ss:$8 sps:$4 sm:$0xff]   ;;  %v1565_v34 = vld [vmem:[%s258_s5] ss:$0 sm:$0xff]  ;;  %p1303_p6 = pneg %p1302_p4 }
  0x4d   : > { %988 = vmatprep.subr.bf16.mxu0 %v1148_v6  ;;  %1049 = vmatprep.subr.bf16.mxu1 %v1148_v6  ;;  %v1181_v31 = vld [vmem:[#allocation2 + $0x70] ss:$8 sps:$4 sm:$0xff]   ;;  %s1306_s11 = scalar_lea.vmem %s1305_s18, 4096 }
  0x4e   : > { %p1308_p10 = scmp.lt.s32.totalorder %s1306_s11, %s1300_s7 }
  0x50   : > { %989 = vmatpush3.bf16.msra.mxu0 %v1149_v7  ;;  %1057 = vmatpush3.bf16.msra.mxu1 %v1149_v7  ;;  %p1309_p0 = por %p1308_p10, %p1307_p8 }
  0x51   : > { %990 = vmatprep.subr.bf16.mxu0 %v1150_v8  ;;  %1050 = vmatprep.subr.bf16.mxu1 %v1150_v8 }
  0x52   : > { %p1310_p1 = pnand %p1309_p0, %p1303_p6 }
  0x54   : > { %991 = vmatpush3.bf16.msra.mxu0 %v1151_v9  ;;  %1058 = vmatpush3.bf16.msra.mxu1 %v1151_v9 }
  0x55   : > { %992 = vmatprep.subr.bf16.mxu0 %v1152_v10  ;;  %1051 = vmatprep.subr.bf16.mxu1 %v1152_v10 }
  0x58   : > { %993 = vmatpush3.bf16.msra.mxu0 %v1153_v13  ;;  %1059 = vmatpush3.bf16.msra.mxu1 %v1153_v13 }
  0x59   : > { %994 = vmatprep.subr.bf16.mxu0 %v1154_v14  ;;  %1052 = vmatprep.subr.bf16.mxu1 %v1154_v14 }
  0x5c   : > { %995 = vmatpush3.bf16.msra.mxu0 %v1155_v15  ;;  %1060 = vmatpush3.bf16.msra.mxu1 %v1155_v15 }
  0x5d   : > { %996 = vmatprep.subr.bf16.mxu0 %v1156_v16  ;;  %1053 = vmatprep.subr.bf16.mxu1 %v1156_v16 }
  0x60   : > { %997 = vmatpush3.bf16.msra.mxu0 %v1157_v17  ;;  %1061 = vmatpush3.bf16.msra.mxu1 %v1157_v17 }
  0x63   : > { %561 = vmatmul.mubr.bf16.vlgmr.msra.gmra.mxu0 %v1158_v18  ;;  %593 = vmatmul.mubr.bf16.vlgmr.msra.gmra.mxu1 %v1161_v19 }
  0x64   : > { %568 = vmatprep.mubr.bf16.mxu0 %v1164_v20  ;;  %600 = vmatprep.mubr.bf16.mxu1 %v1166_v21 }
  0x6b   : > { %569 = vmatmul.mubr.bf16.gmra.mxu0 %v1168_v22  ;;  %601 = vmatmul.mubr.bf16.gmra.mxu1 %v1169_v23 }
  0x6c   : > { %576 = vmatprep.mubr.bf16.mxu0 %v1170_v24  ;;  %608 = vmatprep.mubr.bf16.mxu1 %v1172_v25 }
  0x73   : > { %577 = vmatmul.mubr.bf16.gmra.mxu0 %v1174_v26  ;;  %609 = vmatmul.mubr.bf16.gmra.mxu1 %v1175_v27 }
  0x74   : > { %584 = vmatprep.mubr.bf16.mxu0 %v1176_v28  ;;  %616 = vmatprep.mubr.bf16.mxu1 %v1178_v29 }
  0x7b   : > { %585 = vmatmul.mubr.bf16.gmra.mxu0 %v1180_v30  ;;  %617 = vmatmul.mubr.bf16.gmra.mxu1 %v1181_v31 }
 0x123   : > { %v998_v32 = vpop.f32.mrf.mxu0  ;;  %v1022_v33 = vpop.f32.mrf.mxu1 }
 0x125   : > { %v999_v35 = vpop.f32.mrf.mxu0  ;;  %v1023_v36 = vpop.f32.mrf.mxu1 }
 0x126   : > { %v1000_v37 = vadd.f32 %v999_v35, %v998_v32  ;;  %v1024_v38 = vadd.f32 %v1023_v36, %v1022_v33 }
 0x127   : > { %v1001_v39 = vpop.f32.mrf.mxu0  ;;  %v1025_v40 = vpop.f32.mrf.mxu1 }
 0x128   : > { %v625_v41 = vadd.f32 %v1000_v37, %v1565_v34  ;;  %v633_v42 = vadd.f32 %v1024_v38, %v1565_v34 }
 0x129   : > { %v1002_v43 = vpop.f32.mrf.mxu0  ;;  %v1026_v44 = vpop.f32.mrf.mxu1 }
 0x12a   : > { %v962_v45 = vmul.f32 -1.442695, %v625_v41  ;;  %v970_v46 = vmul.f32 -1.442695, %v633_v42  ;;  %v1003_v47 = vadd.f32 %v1002_v43, %v1001_v39  ;;  %v1027_v48 = vadd.f32 %v1026_v44, %v1025_v40 }
 0x12b   : > { %v1004_v49 = vpop.f32.mrf.mxu0  ;;  %v1028_v50 = vpop.f32.mrf.mxu1 }
 0x12c   : > { %1182 = vpow2.f32 %v962_v45  ;;  %v626_v51 = vadd.f32 %v1003_v47, %v1565_v34  ;;  %v634_v52 = vadd.f32 %v1027_v48, %v1565_v34 }
 0x12d   : > { %1184 = vpow2.f32 %v970_v46  ;;  %v1005_v53 = vpop.f32.mrf.mxu0  ;;  %v1029_v54 = vpop.f32.mrf.mxu1 }
 0x12e   : > { %v963_v55 = vmul.f32 -1.442695, %v626_v51  ;;  %v971_v56 = vmul.f32 -1.442695, %v634_v52  ;;  %v1006_v57 = vadd.f32 %v1005_v53, %v1004_v49  ;;  %v1030_v58 = vadd.f32 %v1029_v54, %v1028_v50 }
 0x12f   : > { %v1007_v59 = vpop.f32.mrf.mxu0  ;;  %v1031_v60 = vpop.f32.mrf.mxu1 }
 0x130   : > { %1186 = vpow2.f32 %v963_v55  ;;  %v627_v61 = vadd.f32 %v1006_v57, %v1565_v34  ;;  %v635_v62 = vadd.f32 %v1030_v58, %v1565_v34 }
 0x131   : > { %1188 = vpow2.f32 %v971_v56  ;;  %v1008_v63 = vpop.f32.mrf.mxu0  ;;  %v1032_v0 = vpop.f32.mrf.mxu1 }
 0x132   : > { %v964_v1 = vmul.f32 -1.442695, %v627_v61  ;;  %v972_v2 = vmul.f32 -1.442695, %v635_v62  ;;  %v1009_v3 = vadd.f32 %v1008_v63, %v1007_v59  ;;  %v1033_v4 = vadd.f32 %v1032_v0, %v1031_v60 }
 0x133   : > { %v1010_v5 = vpop.f32.mrf.mxu0  ;;  %v1034_v6 = vpop.f32.mrf.mxu1 }
 0x134   : > { %1190 = vpow2.f32 %v964_v1  ;;  %v628_v7 = vadd.f32 %v1009_v3, %v1565_v34  ;;  %v636_v8 = vadd.f32 %v1033_v4, %v1565_v34 }
 0x135   : > { %1192 = vpow2.f32 %v972_v2  ;;  %v1011_v9 = vpop.f32.mrf.mxu0  ;;  %v1035_v10 = vpop.f32.mrf.mxu1 }
 0x136   : > { %v965_v11 = vmul.f32 -1.442695, %v628_v7  ;;  %v973_v12 = vmul.f32 -1.442695, %v636_v8  ;;  %v1012_v13 = vadd.f32 %v1011_v9, %v1010_v5  ;;  %v1036_v14 = vadd.f32 %v1035_v10, %v1034_v6 }
 0x137   : > { %v1013_v15 = vpop.f32.mrf.mxu0  ;;  %v1037_v16 = vpop.f32.mrf.mxu1 }
 0x138   : > { %1194 = vpow2.f32 %v965_v11  ;;  %v629_v17 = vadd.f32 %v1012_v13, %v1565_v34  ;;  %v637_v18 = vadd.f32 %v1036_v14, %v1565_v34 }
 0x139   : > { %v1183_v19 = vpop.eup %1182  ;;  %1196 = vpow2.f32 %v973_v12  ;;  %v1014_v20 = vpop.f32.mrf.mxu0 }
 0x13a   : > { %v1038_v21 = vpop.f32.mrf.mxu1  ;;  %v1185_v22 = vpop.eup %1184  ;;  %v724_v23 = vadd.f32 1.0, %v1183_v19  ;;  %v966_v24 = vmul.f32 -1.442695, %v629_v17  ;;  %v1015_v25 = vadd.f32 %v1014_v20, %v1013_v15  ;;  %v974_v27 = vmul.f32 -1.442695, %v637_v18 }
 0x13b   : > { %v732_v26 = vadd.f32 1.0, %v1185_v22  ;;  %v1039_v28 = vadd.f32 %v1038_v21, %v1037_v16  ;;  %v1016_v29 = vpop.f32.mrf.mxu0 }
 0x13c   : > { %v1040_v30 = vpop.f32.mrf.mxu1  ;;  %1198 = vrcp.f32 %v724_v23  ;;  %v630_v31 = vadd.f32 %v1015_v25, %v1565_v34 }
 0x13d   : > { %v1187_v32 = vpop.eup %1186  ;;  %1200 = vrcp.f32 %v732_v26  ;;  %v638_v33 = vadd.f32 %v1039_v28, %v1565_v34  ;;  %v1017_v35 = vpop.f32.mrf.mxu0 }
 0x13e   : > { %v1041_v36 = vpop.f32.mrf.mxu1  ;;  %v1189_v37 = vpop.eup %1188  ;;  %v725_v38 = vadd.f32 1.0, %v1187_v32  ;;  %1202 = vpow2.f32 %v966_v24  ;;  %v967_v39 = vmul.f32 -1.442695, %v630_v31  ;;  %v1018_v40 = vadd.f32 %v1017_v35, %v1016_v29 }
 0x13f   : > { %v733_v41 = vadd.f32 1.0, %v1189_v37  ;;  %1204 = vpow2.f32 %v974_v27  ;;  %v975_v42 = vmul.f32 -1.442695, %v638_v33  ;;  %v1042_v43 = vadd.f32 %v1041_v36, %v1040_v30  ;;  %v1019_v44 = vpop.f32.mrf.mxu0 }
 0x140   : > { %v1043_v45 = vpop.f32.mrf.mxu1  ;;  %1206 = vrcp.f32 %v725_v38  ;;  %v631_v46 = vadd.f32 %v1018_v40, %v1565_v34 }
 0x141   : > { %v1191_v47 = vpop.eup %1190  ;;  %1208 = vrcp.f32 %v733_v41  ;;  %v639_v48 = vadd.f32 %v1042_v43, %v1565_v34  ;;  %v1020_v49 = vpop.f32.mrf.mxu0 }
 0x142   : > { %v1044_v50 = vpop.f32.mrf.mxu1  ;;  %v1193_v51 = vpop.eup %1192  ;;  %v726_v52 = vadd.f32 1.0, %v1191_v47  ;;  %1210 = vpow2.f32 %v967_v39  ;;  %v968_v53 = vmul.f32 -1.442695, %v631_v46  ;;  %v1021_v54 = vadd.f32 %v1020_v49, %v1019_v44 }
 0x143   : > { %v734_v55 = vadd.f32 1.0, %v1193_v51  ;;  %1212 = vpow2.f32 %v975_v42  ;;  %v976_v56 = vmul.f32 -1.442695, %v639_v48  ;;  %v1045_v57 = vadd.f32 %v1044_v50, %v1043_v45 }
 0x144   : > { %1214 = vrcp.f32 %v726_v52  ;;  %v632_v58 = vadd.f32 %v1021_v54, %v1565_v34 }
 0x145   : > { %v1195_v59 = vpop.eup %1194  ;;  %1216 = vrcp.f32 %v734_v55  ;;  %v640_v60 = vadd.f32 %v1045_v57, %v1565_v34 }
 0x146   : > { %v1197_v61 = vpop.eup %1196  ;;  %v727_v62 = vadd.f32 1.0, %v1195_v59  ;;  %1218 = vpow2.f32 %v968_v53  ;;  %v969_v63 = vmul.f32 -1.442695, %v632_v58 }
 0x147   : > { %v735_v0 = vadd.f32 1.0, %v1197_v61  ;;  %1220 = vpow2.f32 %v976_v56  ;;  %v977_v1 = vmul.f32 -1.442695, %v640_v60 }
 0x148   : > { %1222 = vrcp.f32 %v727_v62 }
 0x149   : > { %v1199_v2 = vpop.eup %1198  ;;  %1224 = vrcp.f32 %v735_v0 }
 0x14a   : > { %v1201_v3 = vpop.eup %1200  ;;  %772 = vst [vmem:[%s1585_s21] sm:$0xff] %v1199_v2  ;;  %1226 = vpow2.f32 %v969_v63 }
 0x14b   : > { %v1203_v34 = vpop.eup %1202  ;;  %780 = vst [vmem:[%s1585_s21 + $0x40] sm:$0xff] %v1201_v3  ;;  %1228 = vpow2.f32 %v977_v1 }
 0x14c   : > { %v1205_v4 = vpop.eup %1204  ;;  %v728_v5 = vadd.f32 1.0, %v1203_v34 }
 0x14d   : > { %v1207_v6 = vpop.eup %1206  ;;  %v736_v7 = vadd.f32 1.0, %v1205_v4 }
 0x14e   : > { %v1209_v8 = vpop.eup %1208  ;;  %773 = vst [vmem:[%s1585_s21 + $0x8] sm:$0xff] %v1207_v6  ;;  %1230 = vrcp.f32 %v728_v5 }
 0x14f   : > { %v1211_v9 = vpop.eup %1210  ;;  %781 = vst [vmem:[%s1585_s21 + $0x48] sm:$0xff] %v1209_v8  ;;  %1232 = vrcp.f32 %v736_v7 }
 0x150   : > { %v1213_v10 = vpop.eup %1212  ;;  %v729_v11 = vadd.f32 1.0, %v1211_v9 }
 0x151   : > { %v1215_v12 = vpop.eup %1214  ;;  %v737_v13 = vadd.f32 1.0, %v1213_v10 }
 0x152   : > { %v1217_v14 = vpop.eup %1216  ;;  %774 = vst [vmem:[%s1585_s21 + $0x10] sm:$0xff] %v1215_v12  ;;  %1234 = vrcp.f32 %v729_v11 }
 0x153   : > { %v1219_v15 = vpop.eup %1218  ;;  %782 = vst [vmem:[%s1585_s21 + $0x50] sm:$0xff] %v1217_v14  ;;  %1236 = vrcp.f32 %v737_v13 }
 0x154   : > { %v1221_v16 = vpop.eup %1220  ;;  %v730_v17 = vadd.f32 1.0, %v1219_v15 }
 0x155   : > { %v1223_v18 = vpop.eup %1222  ;;  %v738_v19 = vadd.f32 1.0, %v1221_v16 }
 0x156   : > { %v1225_v20 = vpop.eup %1224  ;;  %775 = vst [vmem:[%s1585_s21 + $0x18] sm:$0xff] %v1223_v18  ;;  %1238 = vrcp.f32 %v730_v17 }
 0x157   : > { %v1227_v21 = vpop.eup %1226  ;;  %783 = vst [vmem:[%s1585_s21 + $0x58] sm:$0xff] %v1225_v20  ;;  %1240 = vrcp.f32 %v738_v19 }
 0x158   : > { %v1229_v22 = vpop.eup %1228  ;;  %v731_v23 = vadd.f32 1.0, %v1227_v21 }
 0x159   : > { %v739_v24 = vadd.f32 1.0, %v1229_v22 }
 0x15a   : > { %1242 = vrcp.f32 %v731_v23 }
 0x15b   : > { %v1231_v25 = vpop.eup %1230  ;;  %1244 = vrcp.f32 %v739_v24 }
 0x15c   : > { %v1233_v26 = vpop.eup %1232  ;;  %776 = vst [vmem:[%s1585_s21 + $0x20] sm:$0xff] %v1231_v25 }
 0x15d   : > { %784 = vst [vmem:[%s1585_s21 + $0x60] sm:$0xff] %v1233_v26 }
 0x15f   : > { %v1235_v27 = vpop.eup %1234 }
 0x160   : > { %v1237_v28 = vpop.eup %1236  ;;  %777 = vst [vmem:[%s1585_s21 + $0x28] sm:$0xff] %v1235_v27 }
 0x161   : > { %785 = vst [vmem:[%s1585_s21 + $0x68] sm:$0xff] %v1237_v28 }
 0x163   : > { %v1239_v29 = vpop.eup %1238 }
 0x164   : > { %v1241_v30 = vpop.eup %1240  ;;  %778 = vst [vmem:[%s1585_s21 + $0x30] sm:$0xff] %v1239_v29 }
 0x165   : > { %786 = vst [vmem:[%s1585_s21 + $0x70] sm:$0xff] %v1241_v30 }
 0x167   : > { %v1243_v31 = vpop.eup %1242 }
 0x168   : > { %v1245_v32 = vpop.eup %1244  ;;  %779 = vst [vmem:[%s1585_s21 + $0x38] sm:$0xff] %v1243_v31 }
 0x169   : > { %787 = vst [vmem:[%s1585_s21 + $0x78] sm:$0xff] %v1245_v32 }
 0x16a   : > { %1313 = shalt.err (!%p1310_p1)
}
 0x16b   : > { %s1314_s9 = scalar_lea.hbm %s1606_s6, 2048  ;;  %s1318_s17 = scalar_lea.hbm %s1661_s3, 4096 }
 0x16c   : > { %p1315_p5 = scmp.ne.s32.totalorder %s1606_s6, %s1314_s9  ;;  %p1319_p11 = scmp.lt.s32.totalorder %s1606_s6, %s1661_s3 }
 0x16d   : > { %p1320_p2 = scmp.lt.s32.totalorder %s1318_s17, %s1314_s9 }
 0x16e   : > { %p1316_p7 = pnand %p1315_p5, %p1678_p13 }
 0x16f   : > { %p1321_p3 = por %p1320_p2, %p1319_p11 }
 0x170   : > { %p1317_p9 = pneg %p1316_p7 }
 0x172   : > { %p1322_p12 = pnand %p1321_p3, %p1317_p9 }
 0x174   : > { %1325 = shalt.err (!%p1322_p12)
}
 0x175   : > { %s1393_s25 = smov 128   ;;  %s1394_s5 = smov 256  }
 0x176   : > { %s1395_s21 = smov 8  }
 0x177   : > { %1068 = dma.vmem_to_hbm [thread:$0]  (%p1678_p13), %s1608_s28, 2048, %s1606_s6, %s789_s15, %s1393_s25, %s1394_s5, %s1395_s21  }
 0x178 PF: > { %s1679_s26 = sld [smem:[#allocation12_spill]]  ;;  %s819_s27 = sand.u32 1, %s1364_s12  }
 0x179   : > { %s1680_s4 = sld [smem:[#allocation11_spill]]  ;;  %s820_s7 = scalar_lea.sflag [#allocation4], %s819_s27 }
 0x17e   : > { %p1681_p4 = scmp.ne.s32.totalorder %s1679_s26, 0 }
 0x17f   : > { %p1682_p6 = scmp.ge.s32.totalorder %s1680_s4, 2 }
 0x181   : > { %p1079_p8 = pnand %p1682_p6, %p1681_p4 }
 0x183   : > { %p1080_p10 = pneg %p1079_p8 }
 0x185   : > { %1359 = dma.done.wait (%p1080_p10), %s820_s7, 2048  }
 0x186   : > { %1361 = vsyncadd (%p1080_p10), %s820_s7, 4294965248  ;;  %s20_s17 = sadd.s32 1, %s1680_s4   ;;  %s1683_s12 = smov %s1368_s13 }
 0x187   : > { %p17_p0 = scmp.ge.s32.totalorder %s20_s17, 4   ;;  %s1684_s13 = smov %s1372_s14 }
 0x188   : > { %s1685_s14 = smov %s1518_s24  ;;  %s1686_s15 = smov %s1380_s16 }
 0x189   : > { %s1687_s16 = smov %s1689_s30  ;;  %19 = sbr.rel (!%p17_p0) target bundleno = 7 (0x7), region = 94 }
 0x18e   :  { %825 = vsyncpa [#allocation3], 1 }
 0x18f   :  { %827 = vsyncpa [#allocation3 + $0x1], 1 }
 0x190   :  { %828 = vsyncpa [#allocation6], 1 }
 0x191   :  { %830 = vsyncpa [#allocation6 + $0x1], 1 }
 0x192   :  { %831 = vsyncpa [#allocation4], 1 }
 0x193   :  { %833 = vsyncpa [#allocation4 + $0x1], 1 }

</bundles_post_ra>
